<compile_context>
chip_gen: v6e
topology: v6e:2x2x1
jax: 0.10.0
libtpu: 0.0.40
codegen_flags: <defaults>
</compile_context>

<pallas_src>
import functools
import numpy as np
import jax
import jax.numpy as jnp
from jax.experimental import pallas as pl
from jax.experimental.pallas import tpu as pltpu


def _round_up(a: int, b: int) -> int:
    return ((a + b - 1) // b) * b


def _rff_coupling_kernel(x_ref, w_ref, b_ref, g_ref, y_ref, *, split, d2, reverse):
    """One batch tile of the RFF coupling forward pass.

    x_ref : [bn, dim]  full input tile (x1 and x2 halves side by side)
    w_ref : [d1, Kp]   fused, pre-transposed (W_s | W_t), zero-padded lanes
    b_ref : [1, Kp]    fused bias (b_s | b_t), zero-padded
    g_ref : [Kp, Dp2]  fused (g_s.T | g_t.T): s cols [0:d2), t cols [d2:2*d2)
    y_ref : [bn, dim]  full output tile
    """
    x = x_ref[...]                                     # [bn, dim] f32
    if reverse:
        x2 = x[:, :split]
        x1 = x[:, split:]
    else:
        x1 = x[:, :split]
        x2 = x[:, split:]

    # First layer: one fused matmul over the padded 2K lane dim, one implicit
    # sublane-broadcast bias add, one cos pass over [bn, Kp].
    h = jnp.cos(
        jnp.dot(x1, w_ref[...], preferred_element_type=jnp.float32)
        + b_ref[...])                                  # [bn, Kp]

    # Second layer: single fused matmul; s/t branch selection is baked into
    # the zero-padded column layout of g_ref.
    st = jnp.dot(h, g_ref[...], preferred_element_type=jnp.float32)  # [bn, Dp2]
    s = jnp.exp(st[:, :d2])
    t = st[:, d2:2 * d2]
    y2 = s * x2 + t                                    # [bn, d2]

    # Direct column-slice stores (no concatenate temp).
    if reverse:
        y_ref[:, :split] = y2
        y_ref[:, split:] = x1
    else:
        y_ref[:, :split] = x1
        y_ref[:, split:] = y2


def rff_coupling_forward(x, params, *, reverse=False, block_n=None):
    """Forward pass of RFFCoupling.  x: [N, dim] float32 -> [N, dim] float32."""
    N, dim = x.shape
    split = dim - dim // 2                 # width of first torch.chunk half
    d1 = (dim - split) if reverse else split
    d2 = dim - d1

    W_s, W_t = params["W_s"], params["W_t"]
    g_s, g_t = params["g_s"], params["g_t"]
    b_s, b_t = params["b_s"], params["b_t"]
    K = W_s.shape[0]
    assert W_s.shape == (K, d1) and W_t.shape == (K, d1)
    assert g_s.shape == (d2, K) and g_t.shape == (d2, K)

    # --- one-time weight packing (layout plumbing, plain JAX) ---------------
    f32 = jnp.float32
    Kp = max(128, _round_up(2 * K, 128))   # lane-dense hidden width (minimal)
    Dp2 = max(128, _round_up(2 * d2, 128))

    W_cat = jnp.zeros((d1, Kp), f32)
    W_cat = W_cat.at[:, :K].set(W_s.T.astype(f32))
    W_cat = W_cat.at[:, K:2 * K].set(W_t.T.astype(f32))
    b_cat = jnp.zeros((1, Kp), f32)
    b_cat = b_cat.at[0, :K].set(b_s.astype(f32))
    b_cat = b_cat.at[0, K:2 * K].set(b_t.astype(f32))
    G_cat = jnp.zeros((Kp, Dp2), f32)
    G_cat = G_cat.at[:K, :d2].set(g_s.T.astype(f32))          # s half
    G_cat = G_cat.at[K:2 * K, d2:2 * d2].set(g_t.T.astype(f32))  # t half

    # --- generation-aware VMEM capacity --------------------------------------
    try:
        vmem_cap = int(getattr(pltpu.get_tpu_info(), "vmem_capacity_bytes",
                               64 << 20))
    except Exception:
        vmem_cap = 64 << 20                # conservative (v7x per-TC) fallback

    # Per-row / fixed VMEM costs used BOTH for bn selection and vmem_limit.
    weight_bytes = 4 * 2 * (d1 * Kp + Kp + Kp * Dp2)   # double-buffered weights
    row_bytes = 4 * (2 * 2 * dim          # x & y tiles, double-buffered
                     + 2 * dim            # x1 / x2 slice copies
                     + 2 * Kp             # pre-cos dot result + h
                     + 2 * Dp2            # st + sliced t copy
                     + 2 * d2)            # s, y2

    # --- batch tile selection -------------------------------------------------
    if block_n is None:
        # ~28 MiB target on v7x (64 MiB/TC), ~56 MiB on v5e/v6e (128 MiB).
        vmem_target = max(16 << 20, (vmem_cap * 7) // 16)
        bn = (vmem_target - weight_bytes - (1 << 20)) // row_bytes
        bn = int(max(8, min(32768, (bn // 8) * 8)))
    else:
        bn = int(block_n)
        assert bn > 0 and bn % 8 == 0

    # Never let the block exceed the array's row extent.
    if N >= 8:
        bn = min(bn, (N // 8) * 8)
    else:
        bn = N                            # block == full array dim is allowed

    # v7x has 2 TensorCores: guarantee >= 2 grid steps when the batch allows.
    if -(-N // bn) < 2 and N >= 16:
        bn = max(8, _round_up(-(-N // 2), 8))

    grid = (pl.cdiv(N, bn),)

    required = weight_bytes + bn * row_bytes + (2 << 20)
    vmem_limit = int(min(max(required, 16 << 20), vmem_cap))

    kernel = functools.partial(_rff_coupling_kernel, split=split, d2=d2,
                               reverse=reverse)

    # TODO(synk): when d2 % 128 == 0, alias x -> out and emit a y2-only
    #   out_spec (input_output_aliases) to halve output writeback (donates x).
    # TODO(synk): for dim >= 256 with split % 128 != 0, deliver lane-aligned
    #   x1/x2 via two in_specs on x instead of in-kernel lane slices.
    return pl.pallas_call(
        kernel,
        out_shape=jax.ShapeDtypeStruct((N, dim), jnp.float32),
        grid_spec=pltpu.PrefetchScalarGridSpec(
            num_scalar_prefetch=0,
            grid=grid,
            in_specs=[
                pl.BlockSpec((bn, dim), lambda i: (i, 0)),   # x (batch-tiled)
                pl.BlockSpec((d1, Kp), lambda i: (0, 0)),    # fused W (resident)
                pl.BlockSpec((1, Kp), lambda i: (0, 0)),     # fused bias
                pl.BlockSpec((Kp, Dp2), lambda i: (0, 0)),   # fused g (resident)
            ],
            out_specs=pl.BlockSpec((bn, dim), lambda i: (i, 0)),
        ),
        compiler_params=pltpu.CompilerParams(
            dimension_semantics=("parallel",),
            vmem_limit_bytes=vmem_limit),
    )(x.astype(f32), W_cat, b_cat, G_cat)


def init_params(key, dim, K=32, reverse=False):
    """Deterministic synthetic params matching RFFCoupling.__init__ shapes."""
    split = dim - dim // 2
    d1 = (dim - split) if reverse else split
    d2 = dim - d1
    k = jax.random.split(key, 6)
    return {
        "W_s": 0.001 * jax.random.normal(k[0], (K, d1), jnp.float32),
        "W_t": 0.001 * jax.random.normal(k[1], (K, d1), jnp.float32),
        "g_s": 0.001 * jax.random.normal(k[2], (d2, K), jnp.float32),
        "g_t": 0.001 * jax.random.normal(k[3], (d2, K), jnp.float32),
        "b_s": jax.random.uniform(k[4], (K,), jnp.float32) * 2 * np.pi * 0.01,
        "b_t": jax.random.uniform(k[5], (K,), jnp.float32) * 2 * np.pi * 0.01,
    }


def _reference_forward(x, params, reverse=False):
    """Pure-JAX reference mirroring the PyTorch forward exactly."""
    N, dim = x.shape
    split = dim - dim // 2
    if reverse:
        x2, x1 = x[:, :split], x[:, split:]
    else:
        x1, x2 = x[:, :split], x[:, split:]

    def ff(xx, gamma, W, phi):
        return jnp.cos(xx @ W.T + phi[None]) @ gamma.T

    s = jnp.exp(ff(x1, params["g_s"], params["W_s"], params["b_s"]))
    t = ff(x1, params["g_t"], params["W_t"], params["b_t"])
    y2 = s * x2 + t
    if reverse:
        return jnp.concatenate([y2, x1], axis=1)
    return jnp.concatenate([x1, y2], axis=1)


if __name__ == "__main__":
    key = jax.random.PRNGKey(0)
    kx, kp1, kp2 = jax.random.split(key, 3)

    N, dim, K = 8, 8, 32            # small shapes consistent with [N, dim] inputs
    x = jax.random.normal(kx, (N, dim), jnp.float32)

    # forward, reverse=False
    params_f = init_params(kp1, dim, K, reverse=False)
    y = jax.block_until_ready(rff_coupling_forward(x, params_f, reverse=False))
    y_ref = _reference_forward(x, params_f, False)
    np.testing.assert_allclose(np.asarray(y), np.asarray(y_ref),
                               rtol=1e-5, atol=1e-5)

    # forward, reverse=True
    params_r = init_params(kp2, dim, K, reverse=True)
    yr = jax.block_until_ready(rff_coupling_forward(x, params_r, reverse=True))
    yr_ref = _reference_forward(x, params_r, True)
    np.testing.assert_allclose(np.asarray(yr), np.asarray(yr_ref),
                               rtol=1e-5, atol=1e-5)

    # ragged batch (N not a multiple of the tile): exercises the no-pad path
    xr = jax.random.normal(jax.random.PRNGKey(1), (13, dim), jnp.float32)
    y13 = jax.block_until_ready(rff_coupling_forward(xr, params_f, reverse=False))
    y13_ref = _reference_forward(xr, params_f, False)
    np.testing.assert_allclose(np.asarray(y13), np.asarray(y13_ref),
                               rtol=1e-5, atol=1e-5)

    print("KERNEL_OK")
</pallas_src>

<mosaic_0001>
module attributes {stable_mosaic.version = 11 : i64} {
  func.func @_rff_coupling_kernel(%arg0: i32, %arg1: memref<8x8xf32, #tpu.memory_space<vmem>>, %arg2: memref<4x128xf32, #tpu.memory_space<vmem>>, %arg3: memref<1x128xf32, #tpu.memory_space<vmem>>, %arg4: memref<128x128xf32, #tpu.memory_space<vmem>>, %arg5: memref<8x8xf32, #tpu.memory_space<vmem>>) attributes {dimension_semantics = [#tpu.dimension_semantics<parallel>], iteration_bounds = array<i64: 1>, scalar_prefetch = 0 : i64, scratch_operands = 0 : i64, tpu.core_type = #tpu.core_type<tc>, window_params = [{transform_indices = @transform_0, window_bounds = array<i64: 8, 8>}, {pipeline_mode = #tpu.pipeline_mode<synchronous>, transform_indices = @transform_1, window_bounds = array<i64: 4, 128>}, {pipeline_mode = #tpu.pipeline_mode<synchronous>, transform_indices = @transform_2, window_bounds = array<i64: 1, 128>}, {pipeline_mode = #tpu.pipeline_mode<synchronous>, transform_indices = @transform_3, window_bounds = array<i64: 128, 128>}, {transform_indices = @transform_4, window_bounds = array<i64: 8, 8>}]} {
    %c0 = arith.constant 0 : index
    %c0_0 = arith.constant 0 : index
    %0 = vector.load %arg1[%c0, %c0_0] : memref<8x8xf32, #tpu.memory_space<vmem>>, vector<8x8xf32>
    %1 = vector.extract_strided_slice %0 {offsets = [0, 0], sizes = [8, 4], strides = [1, 1]} : vector<8x8xf32> to vector<8x4xf32>
    %2 = vector.extract_strided_slice %0 {offsets = [0, 4], sizes = [8, 4], strides = [1, 1]} : vector<8x8xf32> to vector<8x4xf32>
    %c0_1 = arith.constant 0 : index
    %c0_2 = arith.constant 0 : index
    %3 = vector.load %arg2[%c0_1, %c0_2] : memref<4x128xf32, #tpu.memory_space<vmem>>, vector<4x128xf32>
    %cst = arith.constant dense<0.000000e+00> : vector<8x128xf32>
    %4 = tpu.matmul %1, %3, %cst {dimension_numbers = #tpu.dot_dimension_numbers<[1], [0], [0], [1], [0, 0, 1, 1], [], []>} : vector<8x4xf32>, vector<4x128xf32>, vector<8x128xf32> -> vector<8x128xf32>
    %c0_3 = arith.constant 0 : index
    %c0_4 = arith.constant 0 : index
    %5 = vector.load %arg3[%c0_3, %c0_4] : memref<1x128xf32, #tpu.memory_space<vmem>>, vector<1x128xf32>
    %6 = vector.broadcast %5 : vector<1x128xf32> to vector<8x128xf32>
    %7 = arith.addf %4, %6 : vector<8x128xf32>
    %8 = math.cos %7 : vector<8x128xf32>
    %c0_5 = arith.constant 0 : index
    %c0_6 = arith.constant 0 : index
    %9 = vector.load %arg4[%c0_5, %c0_6] : memref<128x128xf32, #tpu.memory_space<vmem>>, vector<128x128xf32>
    %cst_7 = arith.constant dense<0.000000e+00> : vector<8x128xf32>
    %10 = tpu.matmul %8, %9, %cst_7 {dimension_numbers = #tpu.dot_dimension_numbers<[1], [0], [0], [1], [0, 0, 1, 1], [], []>} : vector<8x128xf32>, vector<128x128xf32>, vector<8x128xf32> -> vector<8x128xf32>
    %11 = vector.extract_strided_slice %10 {offsets = [0, 0], sizes = [8, 4], strides = [1, 1]} : vector<8x128xf32> to vector<8x4xf32>
    %12 = math.exp %11 : vector<8x4xf32>
    %13 = vector.extract_strided_slice %10 {offsets = [0, 4], sizes = [8, 4], strides = [1, 1]} : vector<8x128xf32> to vector<8x4xf32>
    %14 = arith.mulf %12, %2 : vector<8x4xf32>
    %15 = arith.addf %14, %13 : vector<8x4xf32>
    %c0_8 = arith.constant 0 : index
    %c0_9 = arith.constant 0 : index
    %16 = vector.load %arg5[%c0_8, %c0_9] : memref<8x8xf32, #tpu.memory_space<vmem>>, vector<8x4xf32>
    tpu.vector_store %arg5[%c0_8, %c0_9], %1 {strides = array<i32>} : memref<8x8xf32, #tpu.memory_space<vmem>>, vector<8x4xf32>,
    %c0_10 = arith.constant 0 : index
    %c4 = arith.constant 4 : index
    %17 = vector.load %arg5[%c0_10, %c4] : memref<8x8xf32, #tpu.memory_space<vmem>>, vector<8x4xf32>
    tpu.vector_store %arg5[%c0_10, %c4], %15 {strides = array<i32>} : memref<8x8xf32, #tpu.memory_space<vmem>>, vector<8x4xf32>,
    return
  }
  func.func @transform_0(%arg0: i32) -> (i32, i32) {
    %c0_i32 = arith.constant 0 : i32
    %c0_i32_0 = arith.constant 0 : i32
    return %arg0, %c0_i32 : i32, i32
  }
  func.func @transform_1(%arg0: i32) -> (i32, i32) {
    %c0_i32 = arith.constant 0 : i32
    %c0_i32_0 = arith.constant 0 : i32
    %c0_i32_1 = arith.constant 0 : i32
    return %c0_i32, %c0_i32_0 : i32, i32
  }
  func.func @transform_2(%arg0: i32) -> (i32, i32) {
    %c0_i32 = arith.constant 0 : i32
    %c0_i32_0 = arith.constant 0 : i32
    %c0_i32_1 = arith.constant 0 : i32
    return %c0_i32, %c0_i32_0 : i32, i32
  }
  func.func @transform_3(%arg0: i32) -> (i32, i32) {
    %c0_i32 = arith.constant 0 : i32
    %c0_i32_0 = arith.constant 0 : i32
    %c0_i32_1 = arith.constant 0 : i32
    return %c0_i32, %c0_i32_0 : i32, i32
  }
  func.func @transform_4(%arg0: i32) -> (i32, i32) {
    %c0_i32 = arith.constant 0 : i32
    %c0_i32_0 = arith.constant 0 : i32
    return %arg0, %c0_i32 : i32, i32
  }
}

</mosaic_0001>

<bundles_post_ra>
// kernel: tpu_custom_call.1
= control target key start
LH: loop header
LB: loop body
LE: loop exit
PB: predicated region body
PF: predicated region fallthrough
CT: control target
= control target key end

     0   :  { %9 = vsyncpa [#allocation3], 0  ;;  %s622_s0 = inlined_call_operand.hbm [shape: f32[8,8], index: 0, kind: input, shape index: {}]   ;;  %s623_s1 = inlined_call_operand.hbm [shape: f32[4,128], index: 1, kind: input, shape index: {}]   ;;  %s624_s2 = inlined_call_operand.vmem [shape: f32[1,128], index: 2, kind: input, shape index: {}]   ;;  %s625_s3 = inlined_call_operand.hbm [shape: f32[128,128], index: 3, kind: input, shape index: {}]   ;;  %s626_s4 = inlined_call_operand.hbm [shape: f32[8,8], index: 4, kind: output, shape index: {}]  }
   0x1   :  { %10 = vsyncpa [#allocation6], 0 }
   0x2   :  { %11 = vsyncpa [#allocation4], 0  ;;  %s543_s15 = smov [#allocation5]   ;;  %s544_s17 = smov [#allocation2]  }
   0x3   :  { %s28_s16 = sshll.u32 %s543_s15, 4  ;;  %s18_s18 = sshll.u32 %s544_s17, 4  ;;  %s29_s16 = int_to_ptr.vmem [resolvable:$true] %s28_s16  ;;  %s19_s18 = int_to_ptr.vmem [resolvable:$true] %s18_s18 }
   0x4   :  { %s465_s19 = scalar_lea.vmem %s29_s16, 64  ;;  %p470_p1 = scmp.lt.s32.totalorder %s29_s16, %s29_s16 }
   0x5   :  { %p466_p0 = scmp.ne.s32.totalorder %s29_s16, %s465_s19  ;;  %p471_p2 = scmp.lt.s32.totalorder %s465_s19, %s465_s19 }
   0x7   :  { %p472_p3 = por %p471_p2, %p470_p1 }
   0x9   :  { %p473_p4 = pnand %p472_p3, %p466_p0 }
   0xb   :  { %476 = shalt.err (!%p473_p4)
}
   0xc   :  { %31 = dma.hbm_to_vmem [thread:$0]  %s623_s1, 64, %s29_s16, [#allocation6]  }
   0xd   :  { %s485_s22 = scalar_lea.vmem %s19_s18, 128  ;;  %p490_p6 = scmp.lt.s32.totalorder %s19_s18, %s19_s18 }
   0xe   :  { %p486_p5 = scmp.ne.s32.totalorder %s19_s18, %s485_s22  ;;  %p491_p7 = scmp.lt.s32.totalorder %s485_s22, %s485_s22 }
  0x10   :  { %p492_p8 = por %p491_p7, %p490_p6 }
  0x12   :  { %p493_p9 = pnand %p492_p8, %p486_p5 }
  0x14   :  { %496 = shalt.err (!%p493_p9)
}
  0x15   :  { %21 = dma.hbm_to_vmem [thread:$0]  %s622_s0, 128, %s19_s18, [#allocation3]  }
  0x16   :  { %s545_s25 = smov [#allocation7]  }
  0x17   :  { %s39_s26 = sshll.u32 %s545_s25, 4  ;;  %s40_s26 = int_to_ptr.vmem [resolvable:$true] %s39_s26 }
  0x18   :  { %s505_s27 = scalar_lea.vmem %s40_s26, 2048  ;;  %p510_p11 = scmp.lt.s32.totalorder %s40_s26, %s40_s26 }
  0x19   :  { %p506_p10 = scmp.ne.s32.totalorder %s40_s26, %s505_s27  ;;  %p511_p12 = scmp.lt.s32.totalorder %s505_s27, %s505_s27 }
  0x1b   :  { %p512_p13 = por %p511_p12, %p510_p11 }
  0x1d   :  { %p513_p0 = pnand %p512_p13, %p506_p10 }
  0x1f   :  { %516 = shalt.err (!%p513_p0)
}
  0x20   :  { %s546_s1 = smov 128   ;;  %s547_s28 = smov 8  }
  0x21   :  { %45 = dma.hbm_to_vmem [thread:$0]  %s625_s3, 2048, %s40_s26, [#allocation6], %s546_s1, %s546_s1, %s547_s28  }
  0x22   :  { %537 = dma.done.wait [#allocation3], 128  }
  0x23   :  { %538 = vsyncadd [#allocation3], 4294967168 }
  0x24   :  { %539 = dma.done.wait [#allocation6], 2112  }
  0x25   :  { %540 = vsyncadd [#allocation6], 4294965184  ;;  %v548_v0 = vmov 0.0   ;;  %vm549_vm0 = vmmov 0   ;;  %vm68_vm1 = vcmask 1043456   ;;  %vm64_vm2 = vcmask 31744  }
  0x26   :  { %391 = vmatprep.subr.mxu0 %v548_v0  ;;  %393 = vmatprep.mubr.msk.f32.mxu0 %vm549_vm0, %v548_v0  ;;  %v56_v1 = vld [vmem:[#allocation5] sm:$0xf]  ;;  %v55_v2 = vld [vmem:[#allocation2] sm:$0xff]  ;;  %v258_v5 = vld [vmem:[#allocation7 + $0x68] sm:$0xff]  ;;  %s550_s0 = smov 124   ;;  %s558_s6 = smov [#allocation8]  }
  0x27   :  { %396 = vmatprep.subr.mxu1 %v548_v0  ;;  %428 = vmatprep.mubr.msk.f32.mxu1 %vm549_vm0, %v548_v0  ;;  %342 = vst.msk [vmem:[#allocation8] sm:$0xff] %vm64_vm2, %v55_v2  ;;  %v260_v3 = vld [vmem:[#allocation7 + $0x78] sm:$0xff]  ;;  %v259_v4 = vld [vmem:[#allocation7 + $0x70] sm:$0xff]  ;;  %v257_v6 = vld [vmem:[#allocation7 + $0x60] sm:$0xff]  ;;  %v551_v34 = vmov 2102212464  }
  0x28   :  { %392 = vmatpush3.msk.msra.mxu0 %vm68_vm1, %v56_v1  ;;  %397 = vmatpush3.msra.mxu1 %v260_v3  ;;  %v256_v7 = vld [vmem:[#allocation7 + $0x58] sm:$0xff]  ;;  %v255_v8 = vld [vmem:[#allocation7 + $0x50] sm:$0xff]  ;;  %v254_v9 = vld [vmem:[#allocation7 + $0x48] sm:$0xff]  ;;  %v552_v36 = vmov 920167782   ;;  %s355_s7 = sshll.u32 %s558_s6, 4  ;;  %s356_s7 = int_to_ptr.vmem [resolvable:$true] %s355_s7 }
  0x29   :  { %394 = vmatmul.mubr.msk.f32.vlgmr.msra.gmra.mxu0 %vm64_vm2, %v55_v2  ;;  %398 = vmatprep.subr.mxu1 %v548_v0  ;;  %v253_v10 = vld [vmem:[#allocation7 + $0x40] sm:$0xff]  ;;  %v252_v11 = vld [vmem:[#allocation7 + $0x38] sm:$0xff]  ;;  %v251_v12 = vld [vmem:[#allocation7 + $0x30] sm:$0xff]  ;;  %v553_v40 = vmov 1326507024   ;;  %vm347_vm0 = vcmask 64544   ;;  %p522_p2 = scmp.lt.s32.totalorder %s356_s7, %s356_s7 }
  0x2a   :  { %399 = vmatpush3.msra.mxu1 %v259_v4  ;;  %v250_v13 = vld [vmem:[#allocation7 + $0x28] sm:$0xff]  ;;  %v249_v14 = vld [vmem:[#allocation7 + $0x20] sm:$0xff]  ;;  %v248_v15 = vld [vmem:[#allocation7 + $0x18] sm:$0xff]  ;;  %333 = vrot.lane.b32.xlu0 %v55_v2, %s550_s0  ;;  %v554_v42 = vmov 683565275   ;;  %s517_s8 = scalar_lea.vmem %s356_s7, 128 }
  0x2b   :  { %400 = vmatprep.subr.mxu1 %v548_v0  ;;  %v247_v16 = vld [vmem:[#allocation7 + $0x10] sm:$0xff]  ;;  %v246_v17 = vld [vmem:[#allocation7 + $0x8] sm:$0xff]  ;;  %v245_v18 = vld [vmem:[#allocation7] sm:$0xff]  ;;  %v555_v44 = vmov 2475754826   ;;  %p518_p1 = scmp.ne.s32.totalorder %s356_s7, %s517_s8  ;;  %p523_p3 = scmp.lt.s32.totalorder %s517_s8, %s517_s8 }
  0x2c   :  { %401 = vmatpush3.msra.mxu1 %v258_v5  ;;  %v365_v19 = vld [vmem:[%s624_s2] ss:$0 sm:$0xff]  ;;  %v556_v47 = vmov 2131351028   ;;  %s557_s2 = smov 4  }
  0x2d   :  { %402 = vmatprep.subr.mxu1 %v548_v0  ;;  %p524_p4 = por %p523_p3, %p522_p2 }
  0x2e   :  { %403 = vmatpush3.msra.mxu1 %v257_v6 }
  0x2f   :  { %404 = vmatprep.subr.mxu1 %v548_v0  ;;  %p525_p5 = pnand %p524_p4, %p518_p1 }
  0x30   :  { %405 = vmatpush3.msra.mxu1 %v256_v7 }
  0x31   :  { %406 = vmatprep.subr.mxu1 %v548_v0 }
  0x32   :  { %407 = vmatpush3.msra.mxu1 %v255_v8 }
  0x33   :  { %408 = vmatprep.subr.mxu1 %v548_v0 }
  0x34   :  { %409 = vmatpush3.msra.mxu1 %v254_v9 }
  0x35   :  { %410 = vmatprep.subr.mxu1 %v548_v0 }
  0x36   :  { %411 = vmatpush3.msra.mxu1 %v253_v10 }
  0x37   :  { %412 = vmatprep.subr.mxu1 %v548_v0 }
  0x38   :  { %413 = vmatpush3.msra.mxu1 %v252_v11 }
  0x39   :  { %414 = vmatprep.subr.mxu1 %v548_v0 }
  0x3a   :  { %415 = vmatpush3.msra.mxu1 %v251_v12 }
  0x3b   :  { %416 = vmatprep.subr.mxu1 %v548_v0 }
  0x3c   :  { %417 = vmatpush3.msra.mxu1 %v250_v13 }
  0x3d   :  { %418 = vmatprep.subr.mxu1 %v548_v0 }
  0x3e   :  { %419 = vmatpush3.msra.mxu1 %v249_v14 }
  0x3f   :  { %420 = vmatprep.subr.mxu1 %v548_v0 }
  0x40   :  { %421 = vmatpush3.msra.mxu1 %v248_v15 }
  0x41   :  { %422 = vmatprep.subr.mxu1 %v548_v0 }
  0x42   :  { %423 = vmatpush3.msra.mxu1 %v247_v16 }
  0x43   :  { %424 = vmatprep.subr.mxu1 %v548_v0 }
  0x44   :  { %425 = vmatpush3.msra.mxu1 %v246_v17 }
  0x45   :  { %426 = vmatprep.subr.mxu1 %v548_v0 }
  0x46   :  { %427 = vmatpush3.msra.mxu1 %v245_v18 }
  0xe9   :  { %v138_v20 = vpop.f32.mrf.mxu0 }
  0xea   :  { %v597_v21 = vadd.f32 %v365_v19, %v138_v20 }
  0xeb   :  { %v395_v22 = vpop.f32.mrf.mxu0 }
  0xec   :  { %v145_v23 = vand.u32 2139095040, %v597_v21  ;;  %v142_v24 = vand.u32 2147483647, %v597_v21  ;;  %vm144_vm10 = vcmp.lt.s32.totalorder %v597_v21, 0  ;;  %vm234_vm15 = vweird.f32 %v597_v21 }
  0xee   :  { %v146_v25 = vshrl.u32 %v145_v23, 23  ;;  %v149_v27 = vand.u32 8388607, %v142_v24  ;;  %vm143_vm11 = vcmp.le.f32.partialorder %v142_v24, 0.7853982 }
  0xf0   :  { %v368_v26 = vadd.s32 4294967169, %v146_v25  ;;  %v150_v30 = vor.u32 8388608, %v149_v27 }
  0xf2   :  { %v152_v28 = vadd.s32 1, %v368_v26  ;;  %v190_v38 = vshll.u32 %v150_v30, 8 }
  0xf4   :  { %vm153_vm3 = vcmp.gt.s32.totalorder %v152_v28, 0 }
  0xf5   :  { %v154_v29 = vsel %vm153_vm3, %v152_v28, 0 }
  0xf6   :  { %v156_v31 = vand.u32 31, %v154_v29  ;;  %v155_v32 = vshrl.u32 %v154_v29, 5 }
  0xf8   :  { %v157_v33 = vsub.s32 32, %v156_v31  ;;  %v168_v35 = vshll.u32 %v551_v34, %v156_v31  ;;  %v171_v37 = vshll.u32 %v552_v36, %v156_v31  ;;  %v159_v43 = vshll.u32 %v554_v42, %v156_v31 }
  0xf9   :  { %v162_v46 = vshll.u32 %v555_v44, %v156_v31  ;;  %v165_v49 = vshll.u32 %v556_v47, %v156_v31  ;;  %vm177_vm4 = vcmp.lt.s32.totalorder %v155_v32, 4  ;;  %vm174_vm5 = vcmp.lt.s32.totalorder %v155_v32, 1 }
  0xfa   :  { %v169_v39 = vshrl.u32 %v552_v36, %v157_v33  ;;  %v172_v41 = vshrl.u32 %v553_v40, %v157_v33  ;;  %v160_v45 = vshrl.u32 %v555_v44, %v157_v33  ;;  %v163_v48 = vshrl.u32 %v556_v47, %v157_v33 }
  0xfb   :  { %v166_v50 = vshrl.u32 %v551_v34, %v157_v33  ;;  %v158_v54 = vshrl.u32 %v554_v42, %v157_v33  ;;  %vm175_vm6 = vcmp.lt.s32.totalorder %v155_v32, 2  ;;  %vm176_vm7 = vcmp.lt.s32.totalorder %v155_v32, 3 }
  0xfc   :  { %v170_v51 = vor.u32 %v169_v39, %v168_v35  ;;  %v173_v52 = vor.u32 %v172_v41, %v171_v37  ;;  %v161_v53 = vor.u32 %v160_v45, %v159_v43  ;;  %v164_v55 = vor.u32 %v163_v48, %v162_v46 }
  0xfd   :  { %v167_v56 = vor.u32 %v166_v50, %v165_v49 }
  0xfe   :  { %v183_v57 = vsel %vm177_vm4, %v170_v51, 920167782  ;;  %v187_v58 = vsel %vm177_vm4, %v173_v52, 1326507024  ;;  %v182_v60 = vsel %vm174_vm5, %v161_v53, %v164_v55  ;;  %v178_v63 = vsel %vm174_vm5, %v158_v54, %v161_v53  ;;  %v334_v54 = vpop.permute.xlu0 %333 }
  0xff   :  { %v179_v59 = vsel %vm177_vm4, %v167_v56, 2102212464  ;;  %v184_v61 = vsel %vm176_vm7, %v167_v56, %v183_v57  ;;  %v186_v62 = vsel %vm174_vm5, %v164_v55, %v167_v56  ;;  %v188_v2 = vsel %vm176_vm7, %v170_v51, %v187_v58 }
 0x100   :  { %v180_v0 = vsel %vm176_vm7, %v164_v55, %v179_v59  ;;  %v185_v1 = vsel %vm175_vm6, %v182_v60, %v184_v61  ;;  %v189_v3 = vsel %vm175_vm6, %v186_v62, %v188_v2 }
 0x101   :  { %v603_v4 = vmul.u32.u64.low %v190_v38, %v185_v1  ;;  %v604_v5 = vmul.u32.u64.high %v190_v38, %v185_v1, %v603_v4  ;;  %v606_v6 = vmul.u32.u64.low %v190_v38, %v189_v3  ;;  %v607_v7 = vmul.u32.u64.high %v190_v38, %v189_v3, %v606_v6 }
 0x102   :  { %v181_v8 = vsel %vm175_vm6, %v178_v63, %v180_v0 }
 0x103   :  { %v200_v9 = vadd.s32 1, %v604_v5  ;;  %v197_v10 = vmul.u32 %v190_v38, %v181_v8  ;;  %vm199_vm8 = vc.u32 %v607_v7, %v603_v4  ;;  %v198_v23 = vadd.s32 %v603_v4, %v607_v7 }
 0x105   :  { %v201_v11 = vsel %vm199_vm8, %v200_v9, %v604_v5 }
 0x106   :  { %v202_v12 = vadd.s32 %v201_v11, %v197_v10 }
 0x108   :  { %v203_v13 = vadd.s32 536870912, %v202_v12 }
 0x10a   :  { %v204_v14 = vshrl.u32 %v203_v13, 30 }
 0x10c   :  { %v205_v15 = vshll.u32 %v204_v14, 30  ;;  %v228_v39 = vsub.s32 4, %v204_v14 }
 0x10e   :  { %v206_v16 = vsub.s32 %v202_v12, %v205_v15  ;;  %v229_v40 = vsel %vm144_vm10, %v228_v39, %v204_v14 }
 0x10f   :  { %v231_v41 = vsel %vm143_vm11, 0, %v229_v40 }
 0x110   :  { %v208_v17 = vsub.s32 0, %v206_v16  ;;  %v235_v42 = vand.u32 3, %v231_v41 }
 0x112   :  { %v369_v18 = vmin.u32 %v208_v17, %v206_v16  ;;  %vm240_vm12 = vcmp.eq.s32.totalorder %v235_v42, 2  ;;  %vm237_vm13 = vcmp.eq.s32.totalorder %v235_v42, 0  ;;  %vm236_vm14 = vcmp.lt.s32.totalorder %v235_v42, 2 }
 0x114   :  { %v210_v19 = vclz %v369_v18 }
 0x116   :  { %v370_v20 = vadd.s32 4294967294, %v210_v19 }
 0x118   :  { %vm371_vm9 = vcmp.lt.s32.totalorder %v370_v20, 0 }
 0x119   :  { %v213_v22 = vsel %vm371_vm9, 0, %v370_v20 }
 0x11a   :  { %v214_v25 = vsub.s32 32, %v213_v22  ;;  %v218_v26 = vsub.s32 4294967266, %v213_v22  ;;  %v215_v27 = vshll.u32 %v206_v16, %v213_v22 }
 0x11c   :  { %v216_v28 = vshrl.u32 %v198_v23, %v214_v25  ;;  %v219_v29 = vadd.s32 127, %v218_v26 }
 0x11e   :  { %v217_v30 = vor.u32 %v216_v28, %v215_v27  ;;  %v220_v31 = vshll.u32 %v219_v29, 23 }
 0x120   :  { %v221_v32 = vor.u32 4788187, %v220_v31  ;;  %v224_v34 = vcvt.s32.f32 %v217_v30 }
 0x122   :  { %v222_v33 = vand.u32 2147483647, %v221_v32 }
 0x124   :  { %v225_v35 = vmul.f32 %v224_v34, %v222_v33 }
 0x126   :  { %v226_v36 = vxor.u32 2147483648, %v225_v35 }
 0x128   :  { %v227_v37 = vsel %vm144_vm10, %v226_v36, %v225_v35 }
 0x129   :  { %v230_v38 = vsel %vm143_vm11, %v597_v21, %v227_v37 }
 0x12a   :  { %451 = vcosq.f32 %v230_v38 }
 0x12b   :  { %453 = vsinq.f32 %v230_v38 }
 0x137   :  { %v452_v43 = vpop.eup %451 }
 0x138   :  { %v454_v44 = vpop.eup %453  ;;  %v241_v45 = vxor.u32 2147483648, %v452_v43 }
 0x139   :  { %v238_v46 = vxor.u32 2147483648, %v454_v44 }
 0x13a   :  { %v242_v47 = vsel %vm240_vm12, %v241_v45, %v454_v44 }
 0x13b   :  { %v239_v48 = vsel %vm237_vm13, %v452_v43, %v238_v46 }
 0x13c   :  { %v243_v24 = vsel %vm236_vm14, %v239_v48, %v242_v47 }
 0x13d   :  { %v244_v49 = vsel %vm234_vm15, nan, %v243_v24 }
 0x13e   :  { %429 = vmatmul.mubr.f32.vlgmr.msra.gmra.mxu1 %v244_v49 }
 0x1fe   :  { %v327_v50 = vpop.f32.mrf.mxu1 }
 0x1ff   :  { %338 = vrot.lane.b32.xlu0 %v327_v50, %s550_s0  ;;  %v331_v52 = vmul.f32 1.442695, %v327_v50 }
 0x200   :  { %v430_v51 = vpop.f32.mrf.mxu1 }
 0x201   :  { %455 = vpow2.f32 %v331_v52 }
 0x20e   :  { %v456_v53 = vpop.eup %455 }
 0x20f   :  { %v336_v55 = vmul.f32 %v456_v53, %v334_v54 }
 0x271   :  { %v339_v56 = vpop.permute.xlu0 %338 }
 0x272   :  { %v341_v57 = vadd.f32 %v339_v56, %v336_v55 }
 0x274   :  { %344 = vrot.lane.b32.xlu1 %v341_v57, %s557_s2 }
 0x2e6   :  { %v345_v21 = vpop.permute.xlu1 %344 }
 0x2e7   :  { %348 = vst.msk [vmem:[#allocation8] sm:$0xff] %vm347_vm0, %v345_v21 }
 0x2e8   :  { %528 = shalt.err (!%p525_p5)
}
 0x2e9   :  { %358 = dma.vmem_to_hbm [thread:$0]  %s356_s7, 128, %s626_s4, [#allocation4]  }
 0x2ea   :  { %541 = dma.done.wait [#allocation4], 128  }
 0x2eb   :  { %542 = vsyncadd [#allocation4], 4294967168 }
 0x2ec   :  { %362 = vsyncpa [#allocation3], 1 }
 0x2ed   :  { %363 = vsyncpa [#allocation6], 1 }
 0x2ee   :  { %364 = vsyncpa [#allocation4], 1 }

</bundles_post_ra>
